<compile_context>
chip_gen: v7x
topology: tpu7x:2x2x1
jax: 0.10.0
libtpu: 0.0.40
codegen_flags: <defaults>
</compile_context>

<pallas_src>
import functools

import jax
import jax.numpy as jnp
from jax import lax
from jax.experimental import pallas as pl
from jax.experimental.pallas import tpu as pltpu


# ---------------------------------------------------------------------------
# helpers
# ---------------------------------------------------------------------------

def _default_dw_dtype():
    """bf16 depthwise math on bf16-native VALUs (v6e/v7x); f32 on v2-v5."""
    try:
        kind = jax.devices()[0].device_kind.lower()
    except Exception:
        return jnp.float32
    if any(v in kind for v in ("v2", "v3", "v4", "v5")):
        return jnp.float32
    return jnp.bfloat16


def _roll_lanes(x, shift):
    """Roll a (C, L) value along the lane axis by a static amount.

    32-bit dtypes use the native XLU rotate; packed dtypes (bf16) fall back to
    slice+concatenate, which Mosaic lowers for any element width.
    """
    n = x.shape[-1]
    shift = shift % n
    if shift == 0:
        return x
    if x.dtype.itemsize == 4:
        return pltpu.roll(x, shift=shift, axis=1)
    return jnp.concatenate([x[:, n - shift:], x[:, :n - shift]], axis=-1)


def _expand_relu6(w1, b1, x_bf16, dw_dtype):
    """1x1 expand conv (BN scale folded into w1) + bias + ReLU6 -> dw dtype."""
    h = jnp.dot(w1, x_bf16, preferred_element_type=jnp.float32) + b1
    return jnp.clip(h, 0.0, 6.0).astype(dw_dtype)


# ---------------------------------------------------------------------------
# kernels
# ---------------------------------------------------------------------------

def _lb_kernel_s1(x_ref, w1_ref, b1_ref, wd_ref, m_ref,
                  b2_ref, w3_ref, b3_ref, o_ref,
                  *, width, add_residual, dw_dtype):
    """stride == 1 path.  Activations are (C, H*W); depthwise = rolls + masks."""
    hw = x_ref.shape[2]
    x = x_ref[0]                                              # (Cin, HW) bf16

    h = _expand_relu6(w1_ref[...], b1_ref[...], x, dw_dtype)  # (Ct, HW)

    wd = wd_ref[...]                                          # (9, Ct, 1)
    # --- 3x3 depthwise, pad=1: factored column/row shifts + border masks ---
    # column-shifted copies (kj = -1, +1); masks kill the row wrap-around
    cm = _roll_lanes(h, 1) * m_ref[0]            # reads (i, j-1)
    cp = _roll_lanes(h, hw - 1) * m_ref[1]       # reads (i, j+1)
    # per-kernel-row weighted sums (tap index = (ki+1)*3 + (kj+1))
    s_u = cm * wd[0] + h * wd[1] + cp * wd[2]    # ki = -1
    s_c = cm * wd[3] + h * wd[4] + cp * wd[5]    # ki =  0
    s_d = cm * wd[6] + h * wd[7] + cp * wd[8]    # ki = +1
    # row shifts (+/- one image row) + top/bottom border masks
    acc = (s_c
           + _roll_lanes(s_u, width) * m_ref[2]
           + _roll_lanes(s_d, hw - width) * m_ref[3])

    d = jnp.clip(acc.astype(jnp.float32) + b2_ref[...], 0.0, 6.0)
    d = d.astype(jnp.bfloat16)

    # 1x1 project conv (BN scale folded into w3) + bias (+ identity residual)
    y = jnp.dot(w3_ref[...], d, preferred_element_type=jnp.float32) + b3_ref[...]
    if add_residual:
        y = y + x.astype(jnp.float32)
    o_ref[0] = y.astype(o_ref.dtype)


def _lb_kernel_s2(x_ref, w1_ref, b1_ref, wd_ref, m_ref,
                  b2_ref, w3_ref, b3_ref, o_ref,
                  *, out_width, dw_dtype):
    """stride == 2 path.  x arrives polyphase-split: (1, 4, Cin, Ho*Wo) where
    phase 0=(even row, even col), 1=(even,odd), 2=(odd,even), 3=(odd,odd)."""
    w1 = w1_ref[...]
    b1 = b1_ref[...]
    h_ee = _expand_relu6(w1, b1, x_ref[0, 0], dw_dtype)       # (Ct, Ho*Wo)
    h_eo = _expand_relu6(w1, b1, x_ref[0, 1], dw_dtype)
    h_oe = _expand_relu6(w1, b1, x_ref[0, 2], dw_dtype)
    h_oo = _expand_relu6(w1, b1, x_ref[0, 3], dw_dtype)

    wd = wd_ref[...]                                          # (9, Ct, 1)
    cmask, rmask, rcmask = m_ref[0], m_ref[1], m_ref[2]
    wo = out_width

    # 3x3 / stride 2 / pad 1 depthwise in the polyphase domain: every tap is a
    # phase image shifted by at most one *output* row/col.
    # tap index = (ki+1)*3 + (kj+1)
    acc = (h_ee * wd[4]                                           # ( 0,  0)
           + h_eo * wd[5]                                         # ( 0, +1)
           + (_roll_lanes(h_eo, 1) * cmask) * wd[3]               # ( 0, -1)
           + h_oe * wd[7]                                         # (+1,  0)
           + h_oo * wd[8]                                         # (+1, +1)
           + (_roll_lanes(h_oo, 1) * cmask) * wd[6]               # (+1, -1)
           + (_roll_lanes(h_oe, wo) * rmask) * wd[1]              # (-1,  0)
           + (_roll_lanes(h_oo, wo) * rmask) * wd[2]              # (-1, +1)
           + (_roll_lanes(h_oo, wo + 1) * rcmask) * wd[0])        # (-1, -1)

    d = jnp.clip(acc.astype(jnp.float32) + b2_ref[...], 0.0, 6.0)
    d = d.astype(jnp.bfloat16)

    y = jnp.dot(w3_ref[...], d, preferred_element_type=jnp.float32) + b3_ref[...]
    o_ref[0] = y.astype(o_ref.dtype)


# ---------------------------------------------------------------------------
# host-side operand preparation
# ---------------------------------------------------------------------------

def _masks_s1(H, W, dtype):
    """(4, 1, H*W) masks: [col j>=1, col j<=W-2, row i>=1, row i<=H-2]."""
    ii = jnp.arange(H).reshape(H, 1)
    jj = jnp.arange(W).reshape(1, W)
    col_l = jnp.broadcast_to(jj >= 1, (H, W))
    col_r = jnp.broadcast_to(jj <= W - 2, (H, W))
    row_u = jnp.broadcast_to(ii >= 1, (H, W))
    row_d = jnp.broadcast_to(ii <= H - 2, (H, W))
    m = jnp.stack([col_l, col_r, row_u, row_d]).reshape(4, 1, H * W)
    return m.astype(dtype)


def _masks_s2(Ho, Wo, dtype):
    """(3, 1, Ho*Wo) masks on the output grid: [jo>=1, io>=1, both]."""
    ii = jnp.arange(Ho).reshape(Ho, 1)
    jj = jnp.arange(Wo).reshape(1, Wo)
    c = jnp.broadcast_to(jj >= 1, (Ho, Wo))
    r = jnp.broadcast_to(ii >= 1, (Ho, Wo))
    rc = r & c
    return jnp.stack([c, r, rc]).reshape(3, 1, Ho * Wo).astype(dtype)


def prepare_operands(params, dw_dtype):
    """Fold BN scales into conv weights; lay out weights/biases for the kernel."""
    w1, s1, b1 = params["w1"], params["s1"], params["b1"]     # (Cin, Ct)
    wd, s2, b2 = params["wd"], params["s2"], params["b2"]     # (3, 3, Ct)
    w3, s3, b3 = params["w3"], params["s3"], params["b3"]     # (Ct, Cout)
    Ct = w1.shape[1]
    Cout = w3.shape[1]
    return dict(
        w1=(w1 * s1[None, :]).T.astype(jnp.bfloat16),                 # (Ct, Cin)
        b1=b1.reshape(Ct, 1).astype(jnp.float32),
        wd=(wd * s2[None, None, :]).reshape(9, Ct, 1).astype(dw_dtype),
        b2=b2.reshape(Ct, 1).astype(jnp.float32),
        w3=(w3 * s3[None, :]).T.astype(jnp.bfloat16),                 # (Cout, Ct)
        b3=b3.reshape(Cout, 1).astype(jnp.float32),
    )


def _vmem_limit_bytes(cin, ct, cout, hw, hwo, dw_bytes):
    """Rough working-set estimate -> scoped-VMEM request (clamped to [32,100] MiB)."""
    dw_live = 8 * ct * hw * dw_bytes                  # live depthwise temporaries
    h_f32 = ct * hw * 4                               # expand matmul output
    d_proj = ct * hwo * 2 + cout * hwo * 4            # project in/out
    io = 2 * 2 * (cin * hw + cout * hwo)              # double-buffered bf16 blocks
    wts = 2 * ct * (cin + cout) + 12 * ct + 9 * ct * dw_bytes + 4 * hw * dw_bytes
    est = int(1.5 * (dw_live + h_f32 + d_proj + io + wts)) + (4 << 20)
    return int(min(max(est, 32 << 20), 100 << 20))


# ---------------------------------------------------------------------------
# wrapper
# ---------------------------------------------------------------------------

def linear_bottleneck(x_nchw, params, *, stride, in_channels, out_channels,
                      dw_dtype=None, out_dtype=jnp.bfloat16):
    N, Cin, H, W = x_nchw.shape
    assert Cin == in_channels
    if stride not in (1, 2):
        raise ValueError("only stride in {1, 2} supported")
    if dw_dtype is None:
        dw_dtype = _default_dw_dtype()

    Ho = (H - 1) // stride + 1
    Wo = (W - 1) // stride + 1
    add_residual = (stride == 1 and in_channels == out_channels)

    kop = prepare_operands(params, dw_dtype)
    Ct = kop["b1"].shape[0]
    x = x_nchw.astype(jnp.bfloat16)

    if stride == 1:
        x_in = x.reshape(N, Cin, H * W)               # free reshape, lane-dense
        masks = _masks_s1(H, W, dw_dtype)
        kernel = functools.partial(_lb_kernel_s1, width=W,
                                   add_residual=add_residual, dw_dtype=dw_dtype)
        x_spec = pl.BlockSpec((1, Cin, H * W), lambda n: (n, 0, 0))
    else:
        if H % 2 or W % 2:
            # TODO(synk): odd H/W at stride 2 needs an extra zero row/col mask.
            raise ValueError("stride=2 path requires even H and W")
        # Polyphase split (even/odd rows x cols).  The 1x1 expand is pointwise
        # so it commutes with the split, and the strided 3x3 depthwise becomes
        # 9 taps over the 4 phase images -- output materialized directly at
        # Ho*Wo resolution (no selection matmul, no strided lane access).
        xp = x.reshape(N, Cin, Ho, 2, Wo, 2)
        xp = jnp.transpose(xp, (0, 3, 5, 1, 2, 4))    # (N, rpar, cpar, Cin, Ho, Wo)
        x_in = xp.reshape(N, 4, Cin, Ho * Wo)
        masks = _masks_s2(Ho, Wo, dw_dtype)
        kernel = functools.partial(_lb_kernel_s2, out_width=Wo, dw_dtype=dw_dtype)
        x_spec = pl.BlockSpec((1, 4, Cin, Ho * Wo), lambda n: (n, 0, 0, 0))

    operands = [x_in, kop["w1"], kop["b1"], kop["wd"], masks,
                kop["b2"], kop["w3"], kop["b3"]]

    def _full_spec(a):
        nd = a.ndim
        return pl.BlockSpec(a.shape, lambda n, nd=nd: (0,) * nd)

    in_specs = [x_spec] + [_full_spec(a) for a in operands[1:]]

    dw_bytes = 2 if dw_dtype == jnp.bfloat16 else 4

    out = pl.pallas_call(
        kernel,
        out_shape=jax.ShapeDtypeStruct((N, out_channels, Ho * Wo), out_dtype),
        grid_spec=pltpu.PrefetchScalarGridSpec(
            num_scalar_prefetch=0,
            grid=(N,),
            in_specs=in_specs,
            out_specs=pl.BlockSpec((1, out_channels, Ho * Wo),
                                   lambda n: (n, 0, 0)),
        ),
        compiler_params=pltpu.CompilerParams(
            dimension_semantics=("parallel",),
            vmem_limit_bytes=_vmem_limit_bytes(
                Cin, Ct, out_channels, H * W, Ho * Wo, dw_bytes),
        ),
    )(*operands)

    # (N, Cout, Ho*Wo) -> NCHW is a free reshape.
    return out.reshape(N, out_channels, Ho, Wo)


# ---------------------------------------------------------------------------
# synthetic params + pure-JAX reference
# ---------------------------------------------------------------------------

def init_params(key, in_channels, out_channels, t=6):
    """Deterministic synthetic parameters; BN (+ conv bias) folded to scale/bias."""
    Ct = in_channels * t
    eps = 1e-5
    ks = jax.random.split(key, 18)

    def bn_fold(gk, bk, mk, vk, conv_bias, C):
        gamma = jax.random.uniform(gk, (C,), jnp.float32, 0.5, 1.5)
        beta = 0.1 * jax.random.normal(bk, (C,), jnp.float32)
        mean = 0.1 * jax.random.normal(mk, (C,), jnp.float32)
        var = jax.random.uniform(vk, (C,), jnp.float32, 0.5, 1.5)
        scale = gamma * lax.rsqrt(var + eps)
        bias = beta + (conv_bias - mean) * scale
        return scale, bias

    w1 = 0.1 * jax.random.normal(ks[0], (in_channels, Ct), jnp.float32)
    b1c = 0.1 * jax.random.normal(ks[1], (Ct,), jnp.float32)
    wd = 0.1 * jax.random.normal(ks[2], (3, 3, Ct), jnp.float32)
    b2c = 0.1 * jax.random.normal(ks[3], (Ct,), jnp.float32)
    w3 = 0.1 * jax.random.normal(ks[4], (Ct, out_channels), jnp.float32)
    b3c = 0.1 * jax.random.normal(ks[5], (out_channels,), jnp.float32)

    s1, b1 = bn_fold(ks[6], ks[7], ks[8], ks[9], b1c, Ct)
    s2, b2 = bn_fold(ks[10], ks[11], ks[12], ks[13], b2c, Ct)
    s3, b3 = bn_fold(ks[14], ks[15], ks[16], ks[17], b3c, out_channels)

    return dict(w1=w1, s1=s1, b1=b1, wd=wd, s2=s2, b2=b2, w3=w3, s3=s3, b3=b3)


def _reference(x_nchw, params, stride, dw_dtype, out_dtype=jnp.bfloat16):
    """XLA-conv reference built from the SAME folded/quantized operands the
    kernel consumes (mirrors the kernel's cast points) to isolate correctness."""
    kop = prepare_operands(params, dw_dtype)
    N, Cin, H, W = x_nchw.shape
    w1 = kop["w1"].astype(jnp.float32)          # (Ct, Cin)
    wd = kop["wd"][:, :, 0].astype(jnp.float32)  # (9, Ct)
    w3 = kop["w3"].astype(jnp.float32)          # (Cout, Ct)
    b1, b2, b3 = kop["b1"][:, 0], kop["b2"][:, 0], kop["b3"][:, 0]
    Ct, Cout = w1.shape[0], w3.shape[0]

    xq = x_nchw.astype(jnp.bfloat16).astype(jnp.float32)
    x = jnp.transpose(xq, (0, 2, 3, 1))          # NHWC
    dn = ("NHWC", "HWIO", "NHWC")
    hp = lax.Precision.HIGHEST
    h = lax.conv_general_dilated(x, w1.T.reshape(1, 1, Cin, Ct), (1, 1), "VALID",
                                 dimension_numbers=dn, precision=hp)
    h = jnp.clip(h + b1, 0.0, 6.0).astype(dw_dtype).astype(jnp.float32)
    d = lax.conv_general_dilated(h, wd.reshape(3, 3, 1, Ct), (stride, stride),
                                 ((1, 1), (1, 1)), dimension_numbers=dn,
                                 feature_group_count=Ct, precision=hp)
    d = jnp.clip(d + b2, 0.0, 6.0).astype(jnp.bfloat16).astype(jnp.float32)
    y = lax.conv_general_dilated(d, w3.T.reshape(1, 1, Ct, Cout), (1, 1), "VALID",
                                 dimension_numbers=dn, precision=hp)
    y = y + b3
    if stride == 1 and Cin == Cout:
        y = y + x
    y = jnp.transpose(y, (0, 3, 1, 2))
    return y.astype(out_dtype).astype(jnp.float32)


def _max_rel_err(out, ref):
    o = out.astype(jnp.float32)
    return float(jnp.max(jnp.abs(o - ref) / (1.0 + jnp.abs(ref))))


if __name__ == "__main__":
    key = jax.random.PRNGKey(0)
    k1, k2, k3 = jax.random.split(key, 3)

    dw_dtype = _default_dw_dtype()

    # --- Test 1: stride=1, Cin == Cout -> residual path exercised ---
    N, Cin, H, W = 2, 4, 16, 16
    Cout, stride, t = 4, 1, 6
    x_nchw = jax.random.normal(k1, (N, Cin, H, W), jnp.float32)
    params = init_params(k2, Cin, Cout, t)

    out = linear_bottleneck(x_nchw, params, stride=stride,
                            in_channels=Cin, out_channels=Cout)
    out = jax.block_until_ready(out)
    assert out.shape == (N, Cout, H, W), out.shape
    ref = _reference(x_nchw, params, stride, dw_dtype)
    err1 = _max_rel_err(out, ref)
    assert err1 < 2e-2, f"stride=1 max rel err {err1}"

    # --- Test 2: stride=2, Cin != Cout -> polyphase downsampling path ---
    Cout2, stride2 = 8, 2
    params2 = init_params(k3, Cin, Cout2, t)
    out2 = linear_bottleneck(x_nchw, params2, stride=stride2,
                             in_channels=Cin, out_channels=Cout2)
    out2 = jax.block_until_ready(out2)
    assert out2.shape == (N, Cout2, 8, 8), out2.shape
    ref2 = _reference(x_nchw, params2, stride2, dw_dtype)
    err2 = _max_rel_err(out2, ref2)
    assert err2 < 2e-2, f"stride=2 max rel err {err2}"

    print("KERNEL_OK")
</pallas_src>

<mosaic_0001>
module attributes {stable_mosaic.version = 11 : i64} {
  func.func @_lb_kernel_s1(%arg0: i32, %arg1: memref<1x4x256xbf16, #tpu.memory_space<vmem>>, %arg2: memref<24x4xbf16, #tpu.memory_space<vmem>>, %arg3: memref<24x1xf32, #tpu.memory_space<vmem>>, %arg4: memref<9x24x1xbf16, #tpu.memory_space<vmem>>, %arg5: memref<4x1x256xbf16, #tpu.memory_space<vmem>>, %arg6: memref<24x1xf32, #tpu.memory_space<vmem>>, %arg7: memref<4x24xbf16, #tpu.memory_space<vmem>>, %arg8: memref<4x1xf32, #tpu.memory_space<vmem>>, %arg9: memref<1x4x256xbf16, #tpu.memory_space<vmem>>) attributes {dimension_semantics = [#tpu.dimension_semantics<parallel>], iteration_bounds = array<i64: 2>, scalar_prefetch = 0 : i64, scratch_operands = 0 : i64, tpu.core_type = #tpu.core_type<tc>, window_params = [{transform_indices = @transform_0, window_bounds = array<i64: 1, 4, 256>}, {pipeline_mode = #tpu.pipeline_mode<synchronous>, transform_indices = @transform_1, window_bounds = array<i64: 24, 4>}, {pipeline_mode = #tpu.pipeline_mode<synchronous>, transform_indices = @transform_2, window_bounds = array<i64: 24, 1>}, {pipeline_mode = #tpu.pipeline_mode<synchronous>, transform_indices = @transform_3, window_bounds = array<i64: 9, 24, 1>}, {pipeline_mode = #tpu.pipeline_mode<synchronous>, transform_indices = @transform_4, window_bounds = array<i64: 4, 1, 256>}, {pipeline_mode = #tpu.pipeline_mode<synchronous>, transform_indices = @transform_5, window_bounds = array<i64: 24, 1>}, {pipeline_mode = #tpu.pipeline_mode<synchronous>, transform_indices = @transform_6, window_bounds = array<i64: 4, 24>}, {pipeline_mode = #tpu.pipeline_mode<synchronous>, transform_indices = @transform_7, window_bounds = array<i64: 4, 1>}, {transform_indices = @transform_8, window_bounds = array<i64: 1, 4, 256>}]} {
    %c0 = arith.constant 0 : index
    %c0_0 = arith.constant 0 : index
    %c0_1 = arith.constant 0 : index
    %0 = vector.load %arg1[%c0, %c0_0, %c0_1] : memref<1x4x256xbf16, #tpu.memory_space<vmem>>, vector<1x4x256xbf16>
    %1 = vector.shape_cast %0 : vector<1x4x256xbf16> to vector<4x256xbf16>
    %c0_2 = arith.constant 0 : index
    %c0_3 = arith.constant 0 : index
    %2 = vector.load %arg2[%c0_2, %c0_3] : memref<24x4xbf16, #tpu.memory_space<vmem>>, vector<24x4xbf16>
    %c0_4 = arith.constant 0 : index
    %c0_5 = arith.constant 0 : index
    %3 = vector.load %arg3[%c0_4, %c0_5] : memref<24x1xf32, #tpu.memory_space<vmem>>, vector<24x1xf32>
    %cst = arith.constant dense<0.000000e+00> : vector<24x256xf32>
    %4 = tpu.matmul %2, %1, %cst {dimension_numbers = #tpu.dot_dimension_numbers<[1], [0], [0], [1], [0, 0, 1, 1], [], []>} : vector<24x4xbf16>, vector<4x256xbf16>, vector<24x256xf32> -> vector<24x256xf32>
    %5 = vector.broadcast %3 : vector<24x1xf32> to vector<24x256xf32>
    %6 = arith.addf %4, %5 : vector<24x256xf32>
    %cst_6 = arith.constant 0.000000e+00 : f32
    %cst_7 = arith.constant 6.000000e+00 : f32
    %7 = vector.broadcast %cst_6 : f32 to vector<24x256xf32>
    %8 = arith.maximumf %7, %6 : vector<24x256xf32>
    %9 = vector.broadcast %cst_7 : f32 to vector<24x256xf32>
    %10 = arith.minimumf %9, %8 : vector<24x256xf32>
    %11 = arith.truncf %10 : vector<24x256xf32> to vector<24x256xbf16>
    %c0_8 = arith.constant 0 : index
    %c0_9 = arith.constant 0 : index
    %c0_10 = arith.constant 0 : index
    %12 = vector.load %arg4[%c0_8, %c0_9, %c0_10] : memref<9x24x1xbf16, #tpu.memory_space<vmem>>, vector<9x24x1xbf16>
    %13 = vector.extract_strided_slice %11 {offsets = [0, 255], sizes = [24, 1], strides = [1, 1]} : vector<24x256xbf16> to vector<24x1xbf16>
    %14 = vector.extract_strided_slice %11 {offsets = [0, 0], sizes = [24, 255], strides = [1, 1]} : vector<24x256xbf16> to vector<24x255xbf16>
    %15 = tpu.concatenate %13, %14 in 1 : vector<24x1xbf16>, vector<24x255xbf16> -> vector<24x256xbf16>
    %c0_11 = arith.constant 0 : index
    %c0_12 = arith.constant 0 : index
    %c0_13 = arith.constant 0 : index
    %16 = vector.load %arg5[%c0_11, %c0_12, %c0_13] : memref<4x1x256xbf16, #tpu.memory_space<vmem>>, vector<1x1x256xbf16>
    %17 = vector.shape_cast %16 : vector<1x1x256xbf16> to vector<1x256xbf16>
    %18 = vector.broadcast %17 : vector<1x256xbf16> to vector<24x256xbf16>
    %19 = arith.mulf %15, %18 : vector<24x256xbf16>
    %20 = vector.extract_strided_slice %11 {offsets = [0, 1], sizes = [24, 255], strides = [1, 1]} : vector<24x256xbf16> to vector<24x255xbf16>
    %21 = vector.extract_strided_slice %11 {offsets = [0, 0], sizes = [24, 1], strides = [1, 1]} : vector<24x256xbf16> to vector<24x1xbf16>
    %22 = tpu.concatenate %20, %21 in 1 : vector<24x255xbf16>, vector<24x1xbf16> -> vector<24x256xbf16>
    %c1 = arith.constant 1 : index
    %c0_14 = arith.constant 0 : index
    %c0_15 = arith.constant 0 : index
    %23 = vector.load %arg5[%c1, %c0_14, %c0_15] : memref<4x1x256xbf16, #tpu.memory_space<vmem>>, vector<1x1x256xbf16>
    %24 = vector.shape_cast %23 : vector<1x1x256xbf16> to vector<1x256xbf16>
    %25 = vector.broadcast %24 : vector<1x256xbf16> to vector<24x256xbf16>
    %26 = arith.mulf %22, %25 : vector<24x256xbf16>
    %27 = vector.extract_strided_slice %12 {offsets = [0, 0, 0], sizes = [1, 24, 1], strides = [1, 1, 1]} : vector<9x24x1xbf16> to vector<1x24x1xbf16>
    %28 = vector.shape_cast %27 : vector<1x24x1xbf16> to vector<24x1xbf16>
    %29 = vector.broadcast %28 : vector<24x1xbf16> to vector<24x256xbf16>
    %30 = arith.mulf %19, %29 : vector<24x256xbf16>
    %31 = vector.extract_strided_slice %12 {offsets = [1, 0, 0], sizes = [1, 24, 1], strides = [1, 1, 1]} : vector<9x24x1xbf16> to vector<1x24x1xbf16>
    %32 = vector.shape_cast %31 : vector<1x24x1xbf16> to vector<24x1xbf16>
    %33 = vector.broadcast %32 : vector<24x1xbf16> to vector<24x256xbf16>
    %34 = arith.mulf %11, %33 : vector<24x256xbf16>
    %35 = arith.addf %30, %34 : vector<24x256xbf16>
    %36 = vector.extract_strided_slice %12 {offsets = [2, 0, 0], sizes = [1, 24, 1], strides = [1, 1, 1]} : vector<9x24x1xbf16> to vector<1x24x1xbf16>
    %37 = vector.shape_cast %36 : vector<1x24x1xbf16> to vector<24x1xbf16>
    %38 = vector.broadcast %37 : vector<24x1xbf16> to vector<24x256xbf16>
    %39 = arith.mulf %26, %38 : vector<24x256xbf16>
    %40 = arith.addf %35, %39 : vector<24x256xbf16>
    %41 = vector.extract_strided_slice %12 {offsets = [3, 0, 0], sizes = [1, 24, 1], strides = [1, 1, 1]} : vector<9x24x1xbf16> to vector<1x24x1xbf16>
    %42 = vector.shape_cast %41 : vector<1x24x1xbf16> to vector<24x1xbf16>
    %43 = vector.broadcast %42 : vector<24x1xbf16> to vector<24x256xbf16>
    %44 = arith.mulf %19, %43 : vector<24x256xbf16>
    %45 = vector.extract_strided_slice %12 {offsets = [4, 0, 0], sizes = [1, 24, 1], strides = [1, 1, 1]} : vector<9x24x1xbf16> to vector<1x24x1xbf16>
    %46 = vector.shape_cast %45 : vector<1x24x1xbf16> to vector<24x1xbf16>
    %47 = vector.broadcast %46 : vector<24x1xbf16> to vector<24x256xbf16>
    %48 = arith.mulf %11, %47 : vector<24x256xbf16>
    %49 = arith.addf %44, %48 : vector<24x256xbf16>
    %50 = vector.extract_strided_slice %12 {offsets = [5, 0, 0], sizes = [1, 24, 1], strides = [1, 1, 1]} : vector<9x24x1xbf16> to vector<1x24x1xbf16>
    %51 = vector.shape_cast %50 : vector<1x24x1xbf16> to vector<24x1xbf16>
    %52 = vector.broadcast %51 : vector<24x1xbf16> to vector<24x256xbf16>
    %53 = arith.mulf %26, %52 : vector<24x256xbf16>
    %54 = arith.addf %49, %53 : vector<24x256xbf16>
    %55 = vector.extract_strided_slice %12 {offsets = [6, 0, 0], sizes = [1, 24, 1], strides = [1, 1, 1]} : vector<9x24x1xbf16> to vector<1x24x1xbf16>
    %56 = vector.shape_cast %55 : vector<1x24x1xbf16> to vector<24x1xbf16>
    %57 = vector.broadcast %56 : vector<24x1xbf16> to vector<24x256xbf16>
    %58 = arith.mulf %19, %57 : vector<24x256xbf16>
    %59 = vector.extract_strided_slice %12 {offsets = [7, 0, 0], sizes = [1, 24, 1], strides = [1, 1, 1]} : vector<9x24x1xbf16> to vector<1x24x1xbf16>
    %60 = vector.shape_cast %59 : vector<1x24x1xbf16> to vector<24x1xbf16>
    %61 = vector.broadcast %60 : vector<24x1xbf16> to vector<24x256xbf16>
    %62 = arith.mulf %11, %61 : vector<24x256xbf16>
    %63 = arith.addf %58, %62 : vector<24x256xbf16>
    %64 = vector.extract_strided_slice %12 {offsets = [8, 0, 0], sizes = [1, 24, 1], strides = [1, 1, 1]} : vector<9x24x1xbf16> to vector<1x24x1xbf16>
    %65 = vector.shape_cast %64 : vector<1x24x1xbf16> to vector<24x1xbf16>
    %66 = vector.broadcast %65 : vector<24x1xbf16> to vector<24x256xbf16>
    %67 = arith.mulf %26, %66 : vector<24x256xbf16>
    %68 = arith.addf %63, %67 : vector<24x256xbf16>
    %69 = vector.extract_strided_slice %40 {offsets = [0, 240], sizes = [24, 16], strides = [1, 1]} : vector<24x256xbf16> to vector<24x16xbf16>
    %70 = vector.extract_strided_slice %40 {offsets = [0, 0], sizes = [24, 240], strides = [1, 1]} : vector<24x256xbf16> to vector<24x240xbf16>
    %71 = tpu.concatenate %69, %70 in 1 : vector<24x16xbf16>, vector<24x240xbf16> -> vector<24x256xbf16>
    %c2 = arith.constant 2 : index
    %c0_16 = arith.constant 0 : index
    %c0_17 = arith.constant 0 : index
    %72 = vector.load %arg5[%c2, %c0_16, %c0_17] : memref<4x1x256xbf16, #tpu.memory_space<vmem>>, vector<1x1x256xbf16>
    %73 = vector.shape_cast %72 : vector<1x1x256xbf16> to vector<1x256xbf16>
    %74 = vector.broadcast %73 : vector<1x256xbf16> to vector<24x256xbf16>
    %75 = arith.mulf %71, %74 : vector<24x256xbf16>
    %76 = arith.addf %54, %75 : vector<24x256xbf16>
    %77 = vector.extract_strided_slice %68 {offsets = [0, 16], sizes = [24, 240], strides = [1, 1]} : vector<24x256xbf16> to vector<24x240xbf16>
    %78 = vector.extract_strided_slice %68 {offsets = [0, 0], sizes = [24, 16], strides = [1, 1]} : vector<24x256xbf16> to vector<24x16xbf16>
    %79 = tpu.concatenate %77, %78 in 1 : vector<24x240xbf16>, vector<24x16xbf16> -> vector<24x256xbf16>
    %c3 = arith.constant 3 : index
    %c0_18 = arith.constant 0 : index
    %c0_19 = arith.constant 0 : index
    %80 = vector.load %arg5[%c3, %c0_18, %c0_19] : memref<4x1x256xbf16, #tpu.memory_space<vmem>>, vector<1x1x256xbf16>
    %81 = vector.shape_cast %80 : vector<1x1x256xbf16> to vector<1x256xbf16>
    %82 = vector.broadcast %81 : vector<1x256xbf16> to vector<24x256xbf16>
    %83 = arith.mulf %79, %82 : vector<24x256xbf16>
    %84 = arith.addf %76, %83 : vector<24x256xbf16>
    %85 = arith.extf %84 : vector<24x256xbf16> to vector<24x256xf32>
    %c0_20 = arith.constant 0 : index
    %c0_21 = arith.constant 0 : index
    %86 = vector.load %arg6[%c0_20, %c0_21] : memref<24x1xf32, #tpu.memory_space<vmem>>, vector<24x1xf32>
    %87 = vector.broadcast %86 : vector<24x1xf32> to vector<24x256xf32>
    %88 = arith.addf %85, %87 : vector<24x256xf32>
    %cst_22 = arith.constant 0.000000e+00 : f32
    %cst_23 = arith.constant 6.000000e+00 : f32
    %89 = vector.broadcast %cst_22 : f32 to vector<24x256xf32>
    %90 = arith.maximumf %89, %88 : vector<24x256xf32>
    %91 = vector.broadcast %cst_23 : f32 to vector<24x256xf32>
    %92 = arith.minimumf %91, %90 : vector<24x256xf32>
    %93 = arith.truncf %92 : vector<24x256xf32> to vector<24x256xbf16>
    %c0_24 = arith.constant 0 : index
    %c0_25 = arith.constant 0 : index
    %94 = vector.load %arg7[%c0_24, %c0_25] : memref<4x24xbf16, #tpu.memory_space<vmem>>, vector<4x24xbf16>
    %cst_26 = arith.constant dense<0.000000e+00> : vector<4x256xf32>
    %95 = tpu.matmul %94, %93, %cst_26 {dimension_numbers = #tpu.dot_dimension_numbers<[1], [0], [0], [1], [0, 0, 1, 1], [], []>} : vector<4x24xbf16>, vector<24x256xbf16>, vector<4x256xf32> -> vector<4x256xf32>
    %c0_27 = arith.constant 0 : index
    %c0_28 = arith.constant 0 : index
    %96 = vector.load %arg8[%c0_27, %c0_28] : memref<4x1xf32, #tpu.memory_space<vmem>>, vector<4x1xf32>
    %97 = vector.broadcast %96 : vector<4x1xf32> to vector<4x256xf32>
    %98 = arith.addf %95, %97 : vector<4x256xf32>
    %99 = arith.extf %1 : vector<4x256xbf16> to vector<4x256xf32>
    %100 = arith.addf %98, %99 : vector<4x256xf32>
    %101 = arith.truncf %100 : vector<4x256xf32> to vector<4x256xbf16>
    %c0_29 = arith.constant 0 : index
    %c0_30 = arith.constant 0 : index
    %c0_31 = arith.constant 0 : index
    %102 = vector.load %arg9[%c0_29, %c0_30, %c0_31] : memref<1x4x256xbf16, #tpu.memory_space<vmem>>, vector<1x4x256xbf16>
    %103 = vector.shape_cast %102 : vector<1x4x256xbf16> to vector<4x256xbf16>
    %104 = vector.shape_cast %101 : vector<4x256xbf16> to vector<1x4x256xbf16>
    tpu.vector_store %arg9[%c0_29, %c0_30, %c0_31], %104 {strides = array<i32>} : memref<1x4x256xbf16, #tpu.memory_space<vmem>>, vector<1x4x256xbf16>,
    return
  }
  func.func @transform_0(%arg0: i32) -> (i32, i32, i32) {
    %c0_i32 = arith.constant 0 : i32
    %c0_i32_0 = arith.constant 0 : i32
    %c0_i32_1 = arith.constant 0 : i32
    return %arg0, %c0_i32, %c0_i32_0 : i32, i32, i32
  }
  func.func @transform_1(%arg0: i32) -> (i32, i32) {
    %c0_i32 = arith.constant 0 : i32
    %c0_i32_0 = arith.constant 0 : i32
    %c0_i32_1 = arith.constant 0 : i32
    return %c0_i32, %c0_i32_0 : i32, i32
  }
  func.func @transform_2(%arg0: i32) -> (i32, i32) {
    %c0_i32 = arith.constant 0 : i32
    %c0_i32_0 = arith.constant 0 : i32
    %c0_i32_1 = arith.constant 0 : i32
    return %c0_i32, %c0_i32_0 : i32, i32
  }
  func.func @transform_3(%arg0: i32) -> (i32, i32, i32) {
    %c0_i32 = arith.constant 0 : i32
    %c0_i32_0 = arith.constant 0 : i32
    %c0_i32_1 = arith.constant 0 : i32
    %c0_i32_2 = arith.constant 0 : i32
    return %c0_i32, %c0_i32_0, %c0_i32_1 : i32, i32, i32
  }
  func.func @transform_4(%arg0: i32) -> (i32, i32, i32) {
    %c0_i32 = arith.constant 0 : i32
    %c0_i32_0 = arith.constant 0 : i32
    %c0_i32_1 = arith.constant 0 : i32
    %c0_i32_2 = arith.constant 0 : i32
    return %c0_i32, %c0_i32_0, %c0_i32_1 : i32, i32, i32
  }
  func.func @transform_5(%arg0: i32) -> (i32, i32) {
    %c0_i32 = arith.constant 0 : i32
    %c0_i32_0 = arith.constant 0 : i32
    %c0_i32_1 = arith.constant 0 : i32
    return %c0_i32, %c0_i32_0 : i32, i32
  }
  func.func @transform_6(%arg0: i32) -> (i32, i32) {
    %c0_i32 = arith.constant 0 : i32
    %c0_i32_0 = arith.constant 0 : i32
    %c0_i32_1 = arith.constant 0 : i32
    return %c0_i32, %c0_i32_0 : i32, i32
  }
  func.func @transform_7(%arg0: i32) -> (i32, i32) {
    %c0_i32 = arith.constant 0 : i32
    %c0_i32_0 = arith.constant 0 : i32
    %c0_i32_1 = arith.constant 0 : i32
    return %c0_i32, %c0_i32_0 : i32, i32
  }
  func.func @transform_8(%arg0: i32) -> (i32, i32, i32) {
    %c0_i32 = arith.constant 0 : i32
    %c0_i32_0 = arith.constant 0 : i32
    %c0_i32_1 = arith.constant 0 : i32
    return %arg0, %c0_i32, %c0_i32_0 : i32, i32, i32
  }
}

</mosaic_0001>

<bundles_post_ra>
// kernel: tpu_custom_call.1
= control target key start
LH: loop header
LB: loop body
LE: loop exit
PB: predicated region body
PF: predicated region fallthrough
CT: control target
= control target key end

     0   :  { %13 = vsyncpa [#allocation3], 0  ;;  %s2009_s0 = inlined_call_operand.vmem [shape: bf16[2,4,256], index: 0, kind: input, shape index: {}]   ;;  %s2010_s1 = inlined_call_operand.vmem [shape: bf16[24,4], index: 1, kind: input, shape index: {}]   ;;  %s2011_s2 = inlined_call_operand.vmem [shape: f32[24,1], index: 2, kind: input, shape index: {}]   ;;  %s2012_s3 = inlined_call_operand.vmem [shape: bf16[9,24,1], index: 3, kind: input, shape index: {}]   ;;  %s2013_s4 = inlined_call_operand.vmem [shape: bf16[4,1,256], index: 4, kind: input, shape index: {}]   ;;  %s2014_s5 = inlined_call_operand.vmem [shape: f32[24,1], index: 5, kind: input, shape index: {}]   ;;  %s2015_s6 = inlined_call_operand.vmem [shape: bf16[4,24], index: 6, kind: input, shape index: {}]   ;;  %s2016_s7 = inlined_call_operand.vmem [shape: f32[4,1], index: 7, kind: input, shape index: {}]   ;;  %s2017_s8 = inlined_call_operand.hbm [shape: bf16[2,4,256], index: 8, kind: output, shape index: {}]  }
   0x1   :  { %15 = vsyncpa [#allocation3 + $0x1], 0  ;;  %s1621_s27 = smov 0   ;;  %s1623_s28 = smov 0  }
   0x2   :  { %s1625_s29 = smov 0   ;;  %s1627_s30 = smov 0  }
   0x3 LB: > { %s1642_s9 = sadd.s32 4294967295, %s1565_s30   ;;  %s1404_s10 = sadd.s32 4294967294, %s1565_s30   ;;  %s1565_s30 = sphi %s1627_s30, %s2023_s30   ;;  %s1561_s29 = sphi %s1625_s29, %s2022_s29   ;;  %s1557_s28 = sphi %s1623_s28, %s2021_s28   ;;  %s1553_s27 = sphi %s1621_s27, %s2020_s27  }
   0x4   : > { %s1646_s11 = sadd.s32 1, %s1565_s30   ;;  %s201_s12 = sadd.s32 1, %s1561_s29 }
   0x5   : > { %s198_s13 = ssub.s32 %s1565_s30, %s1646_s11  ;;  %p211_p0 = scmp.ne.s32.totalorder %s1561_s29, %s1557_s28 }
   0x6   : > { %p199_p1 = scmp.eq.s32.totalorder %s198_s13, 0  ;;  %p212_p2 = scmp.eq.s32.totalorder %s1642_s9, 1 }
   0x7   : > { %p217_p3 = scmp.ne.s32.totalorder %s1557_s28, %s1553_s27  ;;  %p218_p4 = scmp.eq.s32.totalorder %s1404_s10, 1 }
   0x8   : > { %s1657_s14 = scalar_select %p199_p1, %s1561_s29, %s201_s12  }
   0x9   : > { %p1659_p5 = por %p212_p2, %p211_p0  ;;  %p1663_p6 = por %p218_p4, %p217_p3 }
   0xa   : > { %p1407_p7 = scmp.ge.s32.totalorder %s1565_s30, 1  ;;  %p265_p8 = scmp.lt.s32.totalorder %s1565_s30, 3 }
   0xc   : > { %p266_p9 = pnand %p1407_p7, %p265_p8 }
   0xd   : > { %p299_p10 = scmp.lt.s32.totalorder (!%p266_p9), %s1642_s9, 1  ;;  %v339_v0 = vlaneseq (!%p266_p9)  ;;  %v1567_v1 = vmov (!%p266_p9), 1983009808   ;;  %v1568_v4 = vmov (!%p266_p9), 0   ;;  %v309_v5 = vld [vmem:[%s2011_s2] sm:$0xff] (!%p266_p9)  ;;  %v310_v7 = vld [vmem:[%s2011_s2 + $0x8] sm:$0xff] (!%p266_p9) }
   0xe   : > { %269 = sbr.rel (%p266_p9) target bundleno = 772 (0x304), region = 52  ;;  %v337_v2 = vunpack.c.l.s4 (!%p266_p9), %v1567_v1  ;;  %390 = vmatprep.mubr.bf16.mxu0 (!%p266_p9), %v1568_v4  ;;  %1499 = vset.pattern.permute.xlu0 (!%p266_p9), %v1568_v4  ;;  %v311_v8 = vld [vmem:[%s2011_s2 + $0x10] sm:$0xff] (!%p266_p9)  ;;  %vm351_vm0 = vcmask (!%p266_p9), 1041408   ;;  %v425_v11 = vld [vmem:[%s2012_s3] sm:$0xf] (!%p266_p9)  ;;  %vm344_vm1 = vcmask (!%p266_p9), 31744  }
   0xf   : > { %v1671_v3 = vshrl.u32 (!%p266_p9), %v339_v0, 7  ;;  %314 = vperm.xlu0 (!%p266_p9), %1499, %v309_v5   ;;  %1500 = vset.pattern.permute.xlu1 (!%p266_p9), %v1568_v4  ;;  %v426_v13 = vld [vmem:[%s2012_s3 + $0x4] sm:$0xf] (!%p266_p9)  ;;  %v428_v16 = vld [vmem:[%s2012_s3 + $0xc] sm:$0xf] (!%p266_p9)  ;;  %s1569_s13 = smov (!%p266_p9), 1  }
  0x10   : > { %v338_v6 = vunpack.c.0.s8 (!%p266_p9), %v337_v2  ;;  %1301 = vmatprep.mubr.bf16.mxu1 (!%p266_p9), %v1568_v4  ;;  %324 = vperm.xlu1 (!%p266_p9), %1500, %v311_v8   ;;  %v1501_v17 = vld [vmem:[%s2010_s1] sm:$0xff] (!%p266_p9)   ;;  %v429_v18 = vld [vmem:[%s2012_s3 + $0x10] sm:$0xf] (!%p266_p9)  ;;  %v431_v19 = vld [vmem:[%s2012_s3 + $0x18] sm:$0xf] (!%p266_p9)  ;;  %vm464_vm2 = vcmask (!%p266_p9), 7168  }
  0x11   : > { %v432_v20 = vld [vmem:[%s2012_s3 + $0x1c] sm:$0xf] (!%p266_p9)  ;;  %v443_v21 = vld [vmem:[%s2012_s3 + $0x48] sm:$0xf] (!%p266_p9)  ;;  %v444_v23 = vld [vmem:[%s2012_s3 + $0x4c] sm:$0xf] (!%p266_p9) }
  0x12   : > { %v341_v9 = vsub.s32 (!%p266_p9), %v338_v6, %v1671_v3  ;;  %v1502_v22 = vld [vmem:[%s2010_s1 + $0x8] ss:$0 sps:$4 sm:$0xff] (!%p266_p9)   ;;  %v446_v24 = vld [vmem:[%s2012_s3 + $0x54] sm:$0xf] (!%p266_p9)  ;;  %v447_v25 = vld [vmem:[%s2012_s3 + $0x58] sm:$0xf] (!%p266_p9) }
  0x13   : > { %319 = vperm.xlu0 (!%p266_p9), %1499, %v310_v7   ;;  %v427_v26 = vld [vmem:[%s2012_s3 + $0x8] sm:$0xf] (!%p266_p9)  ;;  %v430_v27 = vld [vmem:[%s2012_s3 + $0x14] sm:$0xf] (!%p266_p9)  ;;  %v449_v28 = vld [vmem:[%s2012_s3 + $0x60] sm:$0xf] (!%p266_p9) }
  0x14   : > { %587 = vperm.xlu1 (!%p266_p9), %1500, %v425_v11   ;;  %v450_v29 = vld [vmem:[%s2012_s3 + $0x64] sm:$0xf] (!%p266_p9)  ;;  %v433_v30 = vld [vmem:[%s2012_s3 + $0x20] sm:$0xf] (!%p266_p9)  ;;  %v445_v31 = vld [vmem:[%s2012_s3 + $0x50] sm:$0xf] (!%p266_p9) }
  0x15   : > { %s300_s17 = scalar_select %p299_p10, %s1642_s9, 1  ;;  %v448_v32 = vld [vmem:[%s2012_s3 + $0x5c] sm:$0xf]  ;;  %v451_v33 = vld [vmem:[%s2012_s3 + $0x68] sm:$0xf]  ;;  %vm528_vm3 = vcmask 1039360  }
  0x16   : > { %v435_v5 = vld [vmem:[%s2012_s3 + $0x28] sm:$0xf]  ;;  %v437_v6 = vld [vmem:[%s2012_s3 + $0x30] sm:$0xf]  ;;  %v438_v7 = vld [vmem:[%s2012_s3 + $0x34] sm:$0xf] }
  0x17   : > { %s1450_s20 = sshll.u32 %s300_s17, 2  ;;  %599 = vperm.xlu0 %1499, %v426_v13   ;;  %s1570_s17 = smov 127   ;;  %v440_v8 = vld [vmem:[%s2012_s3 + $0x3c] sm:$0xf]  ;;  %v436_v11 = vld [vmem:[%s2012_s3 + $0x2c] sm:$0xf] }
  0x18   : > { %s303_s10 = scalar_lea.vmem %s2009_s0, %s1450_s20  ;;  %637 = vperm.xlu1 %1500, %v428_v16   ;;  %v442_v13 = vld [vmem:[%s2012_s3 + $0x44] sm:$0xf]  ;;  %s1573_s18 = smov 16   ;;  %vm1071_vm4 = vcmask 130048   ;;  %vm1144_vm5 = vcmask 916480   ;;  %vm1262_vm6 = vcmask 1043456  }
  0x19   : > { %v1686_v10 = vld [vmem:[%s303_s10] sm:$0xf]  ;;  %s1574_s19 = smov 112   ;;  %vm1258_vm7 = vcmask 195584  }
  0x1a   : > { %v342_v12 = vrot.slane %v1686_v10, %v341_v9  ;;  %v441_v9 = vld [vmem:[%s2012_s3 + $0x40] sm:$0xf] }
  0x1b   : > { %649 = vperm.xlu0 %1499, %v429_v18  }
  0x1c   : > { %v343_v14 = vcombine.high %v342_v12, %v342_v12  ;;  %v353_v15 = vsel %vm351_vm0, %v342_v12, 0  ;;  %691 = vperm.xlu1 %1500, %v431_v19   ;;  %v439_v12 = vld [vmem:[%s2012_s3 + $0x38] sm:$0xf] }
  0x1e   : > { %1413 = vmatprep.subr.msk.bf16.mxu0 %vm351_vm0, %v343_v14  ;;  %v1211_v14 = vld [vmem:[%s2014_s5] sm:$0xff] }
  0x1f   : > { %359 = vmatpush1.bf16.msra.mxu0 %v353_v15  ;;  %703 = vperm.xlu0 %1499, %v432_v20   ;;  %v1212_v15 = vld [vmem:[%s2014_s5 + $0x8] sm:$0xff] }
  0x20   : > { %903 = vperm.xlu1 %1500, %v443_v21  }
  0x22   : > { %1414 = vmatmul.mubr.msk.bf16.vlgmr.msra.gmra.mrb[0].mxu0 %vm344_vm1, %v1501_v17 }
  0x23   : > { %400 = vmatprep.mubr.bf16.mxu0 %v1568_v4  ;;  %915 = vperm.xlu0 %1499, %v444_v23   ;;  %v434_v4 = vld [vmem:[%s2012_s3 + $0x24] sm:$0xf] }
  0x24   : > { %953 = vperm.xlu1 %1500, %v446_v24  }
  0x27   : > { %965 = vperm.xlu0 %1499, %v447_v25  }
  0x28   : > { %611 = vperm.xlu1 %1500, %v427_v26   ;;  %v1571_v26 = vmov 1966171168  }
  0x2a   : > { %1415 = vmatmul.mubr.msk.bf16.gmra.mrb[4].mxu0 %vm344_vm1, %v1502_v22 }
  0x2b   : > { %661 = vperm.xlu0 %1499, %v430_v27   ;;  %v489_v27 = vunpack.c.l.s4 %v1571_v26 }
  0x2c   : > { %1007 = vperm.xlu1 %1500, %v449_v28  }
  0x2f   : > { %1019 = vperm.xlu0 %1499, %v450_v29  }
  0x30   : > { %715 = vperm.xlu1 %1500, %v433_v30   ;;  %v1572_v30 = vmov 839922192  }
  0x33   : > { %927 = vperm.xlu0 %1499, %v445_v31   ;;  %v591_v31 = vunpack.c.l.s4 %v1572_v30 }
  0x34   : > { %977 = vperm.xlu1 %1500, %v448_v32   ;;  %v490_v32 = vunpack.c.0.s8 %v489_v27 }
  0x37   : > { %1031 = vperm.xlu0 %1499, %v451_v33   ;;  %v1416_v33 = vld.sshfl [vmem:[%s2013_s4] sm:$0x11 pattern:$0x75316420] }
  0x8e   : > { %v315_v34 = vpop.permute.xlu0 %314 }
  0x8f   : > { %v325_v50 = vpop.permute.xlu1 %324 }
  0x92   : > { %v320_v38 = vpop.permute.xlu0 %319 }
  0x93   : > { %v588_v17 = vpop.permute.xlu1 %587 }
  0x96   : > { %v600_v16 = vpop.permute.xlu0 %599 }
  0x97   : > { %v638_v19 = vpop.permute.xlu1 %637 }
  0x9a   : > { %v650_v18 = vpop.permute.xlu0 %649 }
  0x9b   : > { %v1800_v21 = vpop.permute.xlu1 %691 }
  0x9e   : > { %v1798_v20 = vpop.permute.xlu0 %703 }
  0x9f   : > { %v904_v23 = vpop.permute.xlu1 %903 }
  0xa2   : > { %v1802_v22 = vpop.permute.xlu0 %915 }
  0xa3   : > { %v954_v25 = vpop.permute.xlu1 %953 }
  0xa6   : > { %v966_v24 = vpop.permute.xlu0 %965 }
  0xa7   : > { %v612_v29 = vpop.permute.xlu1 %611 }
  0xaa   : > { %v662_v28 = vpop.permute.xlu0 %661 }
  0xf5   : > { %v392_v35 = vpop.f32.mrb[0].mxu0 }
  0xf6   : > { %v393_v36 = vadd.f32 %v392_v35, %v315_v34  ;;  %v394_v37 = vpop.f32.mrb[1].mxu0  ;;  %v592_v35 = vunpack.c.0.s8 %v591_v31 }
  0xf7   : > { %v395_v39 = vadd.f32 %v394_v37, %v315_v34  ;;  %v396_v40 = vpop.f32.mrb[2].mxu0  ;;  %v1020_v34 = vpop.permute.xlu0 %1019  ;;  %v1808_v37 = vsub.s32 %v490_v32, %v1671_v3 }
  0xf8   : > { %v409_v41 = vmax.f32 %v393_v36, 0.0  ;;  %v397_v42 = vadd.f32 %v396_v40, %v320_v38  ;;  %v398_v43 = vpop.f32.mrb[3].mxu0  ;;  %v1008_v36 = vpop.permute.xlu1 %1007  ;;  %v1814_v40 = vsub.s32 %v592_v35, %v1671_v3 }
  0xf9   : > { %v410_v44 = vmax.f32 %v395_v39, 0.0  ;;  %v399_v45 = vadd.f32 %v398_v43, %v320_v38  ;;  %v487_v38 = vcombine.high %v1416_v33, %v1416_v33  ;;  %v1418_v39 = vld.sshfl [vmem:[%s2013_s4 + $0x2] sm:$0x11 pattern:$0x75316420]  ;;  %v494_v43 = vrot.slane %v1416_v33, %v1808_v37 }
  0xfa   : > { %v411_v46 = vmax.f32 %v397_v42, 0.0  ;;  %v415_v48 = vmin.f32 %v409_v41, 6.0 }
  0xfb   : > { %v412_v47 = vmax.f32 %v399_v45, 0.0  ;;  %v416_v51 = vmin.f32 %v410_v44, 6.0  ;;  %v928_v42 = vpop.permute.xlu0 %927  ;;  %v501_v44 = vrot.slane %v487_v38, %v1808_v37  ;;  %v552_v45 = vcombine.high %v1418_v39, %v1418_v39 }
  0xfc   : > { %v417_v49 = vmin.f32 %v411_v46, 6.0  ;;  %v716_v41 = vpop.permute.xlu1 %715  ;;  %v1819_v46 = vsub.s32 0, %v1671_v3  ;;  %v712_v3 = vrot.slane %v1798_v20, %v1814_v40  ;;  %v936_v32 = vrot.slane %v928_v42, %v1814_v40 }
  0xfd   : > { %v418_v52 = vmin.f32 %v412_v47, 6.0  ;;  %v402_v53 = vpop.f32.mrb[4].mxu0  ;;  %v608_v47 = vrot.slane %v600_v16, %v1814_v40 }
  0xfe   : > { %v1749_v54 = vpack.c.bf16 %v417_v49, %v415_v48  ;;  %v403_v55 = vadd.f32 %v402_v53, %v325_v50  ;;  %v404_v56 = vpop.f32.mrb[5].mxu0  ;;  %v596_v48 = vrot.slane %v588_v17, %v1814_v40  ;;  %v503_v49 = vpack.i.b16 %v494_v43, %v494_v43 }
  0xff   : > { %v1751_v57 = vpack.c.bf16 %v418_v52, %v416_v51  ;;  %v405_v58 = vadd.f32 %v404_v56, %v325_v50  ;;  %v406_v59 = vpop.f32.mrb[6].mxu0  ;;  %v510_v50 = vpack.i.b16 %v501_v44, %v501_v44  ;;  %v559_v51 = vrot.slane %v1418_v39, %v1808_v37 }
 0x100   : > { %v413_v60 = vmax.f32 %v403_v55, 0.0  ;;  %v407_v61 = vpop.f32.mrb[7].mxu0  ;;  %460 = vrot.lane.b32.xlu1 %v1749_v54, %s1569_s13  ;;  %v566_v52 = vrot.slane %v552_v45, %v1808_v37  ;;  %v978_v53 = vpop.permute.xlu1 %977  ;;  %v658_v55 = vrot.slane %v650_v18, %v1814_v40  ;;  %v646_v56 = vrot.slane %v638_v19, %v1814_v40 }
 0x101   : > { %v414_v62 = vmax.f32 %v405_v58, 0.0  ;;  %454 = vrot.lane.b32.xlu0 %v1751_v57, %s1569_s13  ;;  %v1827_v58 = vpop.permute.xlu0 %1031  ;;  %v1419_v59 = vcombine.low %v596_v48, %v608_v47  ;;  %v508_v61 = vrot.slane %v503_v49, %v1819_v46  ;;  %v986_v44 = vrot.slane %v978_v53, %v1814_v40 }
 0x102   : > { %v419_v63 = vmin.f32 %v413_v60, 6.0  ;;  %v700_v60 = vrot.slane %v1800_v21, %v1814_v40 }
 0x103   : > { %v420_v0 = vmin.f32 %v414_v62, 6.0  ;;  %v515_v62 = vrot.slane %v510_v50, %v1819_v46 }
 0x104   : > { %520 = vrot.lane.b32.xlu1 %v1749_v54, %s1570_s17  ;;  %v1759_v2 = vpack.c.bf16 %v419_v63, %v419_v63  ;;  %v568_v63 = vpack.i.b16 %v559_v51, %v559_v51 }
 0x105   : > { %v1756_v1 = vpack.c.bf16 %v420_v0, %v420_v0  ;;  %522 = vrot.lane.b32.xlu0 %v1751_v57, %s1570_s17  ;;  %v575_v0 = vpack.i.b16 %v566_v52, %v566_v52 }
 0x106   : > { %v573_v20 = vrot.slane %v568_v63, %v1819_v46 }
 0x107   : > { %v580_v21 = vrot.slane %v575_v0, %v1819_v46 }
 0x108   : > { %456 = vrot.lane.b32.xlu1 %v1756_v1, %s1569_s13 }
 0x109   : > { %462 = vrot.lane.b32.xlu0 %v1759_v2, %s1569_s13 }
 0x10c   : > { %524 = vrot.lane.b32.xlu1 %v1759_v2, %s1570_s17 }
 0x10d   : > { %526 = vrot.lane.b32.xlu0 %v1756_v1, %s1570_s17  ;;  %s296_s17 = sand.u32 1, %s1557_s28  }
 0x10e   : > { %s1331_s25 = scalar_lea.sflag [#allocation3], %s296_s17 }
 0x110   : > { %745 = vperm.xlu1 %1500, %v434_v4   ;;  %v924_v4 = vrot.slane %v1802_v22, %v1814_v40  ;;  %v1423_v22 = vcombine.low %v700_v60, %v712_v3 }
 0x111   : > { %757 = vperm.xlu0 %1499, %v435_v5   ;;  %v974_v5 = vrot.slane %v966_v24, %v1814_v40 }
 0x114   : > { %795 = vperm.xlu1 %1500, %v437_v6   ;;  %v912_v6 = vrot.slane %v904_v23, %v1814_v40 }
 0x115   : > { %807 = vperm.xlu0 %1499, %v438_v7   ;;  %v962_v7 = vrot.slane %v954_v25, %v1814_v40  ;;  %v724_v25 = vrot.slane %v716_v41, %v1814_v40 }
 0x116   : > { %v1431_v23 = vcombine.low %v912_v6, %v924_v4  ;;  %v1432_v4 = vcombine.low %v936_v32, %v936_v32 }
 0x117   : > { %v1433_v24 = vcombine.low %v962_v7, %v974_v5  ;;  %v1424_v43 = vcombine.low %v724_v25, %v724_v25  ;;  %v1040_v5 = vrot.slane %v1827_v58, %v1814_v40 }
 0x118   : > { %849 = vperm.xlu1 %1500, %v440_v8  }
 0x119   : > { %861 = vperm.xlu0 %1499, %v441_v9   ;;  %v1421_v9 = vcombine.low %v646_v56, %v658_v55  ;;  %v997_v42 = vmul.bf16 %v1433_v24, %v1749_v54  ;;  %v998_v7 = vmul.bf16 %v1433_v24, %v1751_v57  ;;  %v1436_v24 = vcombine.low %v1040_v5, %v1040_v5 }
 0x11b   : > { %v682_v39 = vmul.bf16 %v1421_v9, %v1751_v57  ;;  %v681_v41 = vmul.bf16 %v1421_v9, %v1749_v54  ;;  %v1434_v9 = vcombine.low %v986_v44, %v986_v44 }
 0x11c   : > { %769 = vperm.xlu1 %1500, %v436_v11   ;;  %v670_v11 = vrot.slane %v662_v28, %v1814_v40 }
 0x11d   : > { %819 = vperm.xlu0 %1499, %v439_v12   ;;  %v620_v12 = vrot.slane %v612_v29, %v1814_v40 }
 0x11e   : > { %v1422_v27 = vcombine.low %v670_v11, %v670_v11 }
 0x11f   : > { %v1420_v28 = vcombine.low %v620_v12, %v620_v12 }
 0x120   : > { %873 = vperm.xlu1 %1500, %v442_v13   ;;  %v1016_v13 = vrot.slane %v1008_v36, %v1814_v40 }
 0x121   : > { %1216 = vperm.xlu0 %1499, %v1211_v14  }
 0x124   : > { %1221 = vperm.xlu1 %1500, %v1212_v15   ;;  %v1028_v15 = vrot.slane %v1020_v34, %v1814_v40 }
 0x126   : > { %v1435_v33 = vcombine.low %v1016_v13, %v1028_v15  ;;  %v683_v15 = vmul.bf16 %v1422_v27, %v1759_v2 }
 0x172   : > { %v461_v8 = vpop.permute.xlu1 %460 }
 0x173   : > { %v455_v14 = vpop.permute.xlu0 %454 }
 0x174   : > { %v465_v16 = vsel %vm464_vm2, %v461_v8, %v455_v14  ;;  %v472_v17 = vsel %vm464_vm2, %v455_v14, %v461_v8 }
 0x175   : > { %v1846_v18 = vmul.bf16 %v508_v61, %v472_v17  ;;  %v1848_v19 = vmul.bf16 %v515_v62, %v465_v16 }
 0x176   : > { %v521_v26 = vpop.permute.xlu1 %520 }
 0x177   : > { %v631_v29 = vmul.bf16 %v1419_v59, %v1846_v18  ;;  %v632_v30 = vmul.bf16 %v1419_v59, %v1848_v19  ;;  %v523_v31 = vpop.permute.xlu0 %522  ;;  %v947_v45 = vmul.bf16 %v1431_v23, %v1846_v18  ;;  %v948_v55 = vmul.bf16 %v1431_v23, %v1848_v19 }
 0x178   : > { %v529_v34 = vsel %vm528_vm3, %v521_v26, %v523_v31  ;;  %v536_v35 = vsel %vm528_vm3, %v523_v31, %v521_v26  ;;  %v684_v23 = vmul.bf16 %v1422_v27, %v1756_v1 }
 0x179   : > { %v1858_v36 = vmul.bf16 %v573_v20, %v529_v34  ;;  %v1860_v38 = vmul.bf16 %v580_v21, %v536_v35  ;;  %v686_v49 = vadd.bf16 %v682_v39, %v632_v30  ;;  %v685_v51 = vadd.bf16 %v681_v41, %v631_v29 }
 0x17a   : > { %v457_v47 = vpop.permute.xlu1 %456  ;;  %v1002_v58 = vadd.bf16 %v998_v7, %v948_v55  ;;  %v1000_v34 = vmul.bf16 %v1434_v9, %v1756_v1 }
 0x17b   : > { %v463_v48 = vpop.permute.xlu0 %462  ;;  %v736_v50 = vmul.bf16 %v1423_v22, %v1860_v38  ;;  %v735_v52 = vmul.bf16 %v1423_v22, %v1858_v36  ;;  %v1051_v53 = vmul.bf16 %v1435_v33, %v1858_v36  ;;  %v1052_v8 = vmul.bf16 %v1435_v33, %v1860_v38 }
 0x17c   : > { %v466_v56 = vsel %vm464_vm2, %v463_v48, %v457_v47  ;;  %v476_v59 = vsel %vm464_vm2, %v457_v47, %v463_v48  ;;  %v1252_v47 = vld [vmem:[%s2016_s7] sm:$0xf] }
 0x17d   : > { %v1873_v3 = vmul.bf16 %v508_v61, %v476_v59  ;;  %v1875_v60 = vmul.bf16 %v515_v62, %v466_v56  ;;  %v740_v63 = vadd.bf16 %v736_v50, %v686_v49  ;;  %v739_v0 = vadd.bf16 %v735_v52, %v685_v51 }
 0x17e   : > { %v525_v6 = vpop.permute.xlu1 %524  ;;  %v1001_v62 = vadd.bf16 %v997_v42, %v947_v45  ;;  %v1056_v26 = vadd.bf16 %v1052_v8, %v1002_v58  ;;  %v1213_v45 = vld [vmem:[%s2014_s5 + $0x10] sm:$0xff] }
 0x17f   : > { %v633_v11 = vmul.bf16 %v1420_v28, %v1873_v3  ;;  %v634_v12 = vmul.bf16 %v1420_v28, %v1875_v60  ;;  %v527_v61 = vpop.permute.xlu0 %526  ;;  %1061 = vrot.lane.b32.xlu0 %v740_v63, %s1573_s18  ;;  %1067 = vrot.lane.b32.xlu1 %v739_v0, %s1573_s18  ;;  %v949_v25 = vmul.bf16 %v1432_v4, %v1873_v3 }
 0x180   : > { %v530_v13 = vsel %vm528_vm3, %v525_v6, %v527_v61  ;;  %v540_v14 = vsel %vm528_vm3, %v527_v61, %v525_v6  ;;  %v1055_v22 = vadd.bf16 %v1051_v53, %v1001_v62 }
 0x181   : > { %v1888_v16 = vmul.bf16 %v573_v20, %v530_v13  ;;  %v1890_v17 = vmul.bf16 %v580_v21, %v540_v14  ;;  %v688_v28 = vadd.bf16 %v684_v23, %v634_v12  ;;  %v687_v30 = vadd.bf16 %v683_v15, %v633_v11 }
 0x182   : > { %v950_v20 = vmul.bf16 %v1432_v4, %v1875_v60  ;;  %v999_v21 = vmul.bf16 %v1434_v9, %v1759_v2 }
 0x183   : > { %1136 = vrot.lane.b32.xlu0 %v1055_v22, %s1574_s19  ;;  %v738_v29 = vmul.bf16 %v1424_v43, %v1890_v17  ;;  %v737_v31 = vmul.bf16 %v1424_v43, %v1888_v16  ;;  %1138 = vrot.lane.b32.xlu1 %v1056_v26, %s1574_s19  ;;  %v1053_v27 = vmul.bf16 %v1436_v24, %v1888_v16 }
 0x184   : > { %v1054_v35 = vmul.bf16 %v1436_v24, %v1890_v17  ;;  %v1003_v39 = vadd.bf16 %v999_v21, %v949_v25  ;;  %v1004_v41 = vadd.bf16 %v1000_v34, %v950_v20 }
 0x185   : > { %v742_v32 = vadd.bf16 %v738_v29, %v688_v28  ;;  %v741_v33 = vadd.bf16 %v737_v31, %v687_v30 }
 0x186   : > { %v1057_v43 = vadd.bf16 %v1053_v27, %v1003_v39  ;;  %v1058_v44 = vadd.bf16 %v1054_v35, %v1004_v41 }
 0x187   : > { %1063 = vrot.lane.b32.xlu0 %v742_v32, %s1573_s18  ;;  %1069 = vrot.lane.b32.xlu1 %v741_v33, %s1573_s18  ;;  %s1408_s18 = sshll.u32 %s296_s17, 2 }
 0x188   : > { %s298_s20 = scalar_lea.vmem [#allocation2], %s1408_s18 }
 0x189   : > { %s1345_s21 = sshll.u32 %s298_s20, 4  ;;  %s1969_s21 = int_to_ptr.vmem [resolvable:$true] %s1345_s21 }
 0x18a   : > { %s1503_s26 = scalar_lea.vmem %s1969_s21, 64 }
 0x18b   : > { %1140 = vrot.lane.b32.xlu0 %v1057_v43, %s1574_s19  ;;  %1142 = vrot.lane.b32.xlu1 %v1058_v44, %s1574_s19  ;;  %s1451_s19 = sshll.u32 %s1642_s9, 6  ;;  %p1504_p11 = scmp.ne.s32.totalorder %s1969_s21, %s1503_s26 }
 0x18c   : > { %s1967_s24 = scalar_lea.hbm %s2017_s8, %s1451_s19  ;;  %s1575_s9 = smov [#allocation2]  }
 0x18d   : > { %p1505_p12 = pnand %p1504_p11, %p1659_p5  ;;  %s1507_s10 = sshll.u32 %s1575_s9, 4  ;;  %s1508_s10 = int_to_ptr.vmem [resolvable:$false] %s1507_s10 }
 0x18e   : > { %s1509_s12 = scalar_lea.vmem %s1508_s10, 128  ;;  %p1510_p0 = scmp.lt.s32.totalorder %s1969_s21, %s1508_s10 }
 0x18f   : > { %v746_v42 = vpop.permute.xlu1 %745  ;;  %1226 = vperm.xlu0 %1499, %v1213_v45   ;;  %1255 = vperm.xlu1 %1500, %v1252_v47   ;;  %p1506_p13 = pneg %p1505_p12  ;;  %p1511_p1 = scmp.lt.s32.totalorder %s1509_s12, %s1503_s26 }
 0x190   : > { %v758_v48 = vpop.permute.xlu0 %757  ;;  %v754_v49 = vrot.slane %v746_v42, %v1814_v40 }
 0x191   : > { %v766_v50 = vrot.slane %v758_v48, %v1814_v40  ;;  %p1512_p2 = por %p1511_p1, %p1510_p0 }
 0x193   : > { %v796_v51 = vpop.permute.xlu1 %795  ;;  %v1425_v59 = vcombine.low %v754_v49, %v766_v50  ;;  %p1513_p3 = pnand %p1512_p2, %p1506_p13 }
 0x194   : > { %v804_v52 = vrot.slane %v796_v51, %v1814_v40  ;;  %v808_v55 = vpop.permute.xlu0 %807 }
 0x195   : > { %v816_v56 = vrot.slane %v808_v55, %v1814_v40  ;;  %v789_v8 = vmul.bf16 %v1425_v59, %v1846_v18  ;;  %v790_v9 = vmul.bf16 %v1425_v59, %v1848_v19 }
 0x197   : > { %v1427_v53 = vcombine.low %v804_v52, %v816_v56  ;;  %v850_v63 = vpop.permute.xlu1 %849 }
 0x198   : > { %v858_v0 = vrot.slane %v850_v63, %v1814_v40  ;;  %v862_v4 = vpop.permute.xlu0 %861 }
 0x199   : > { %v839_v5 = vmul.bf16 %v1427_v53, %v1749_v54  ;;  %v840_v6 = vmul.bf16 %v1427_v53, %v1751_v57  ;;  %v870_v7 = vrot.slane %v862_v4, %v1814_v40 }
 0x19b   : > { %v1429_v11 = vcombine.low %v858_v0, %v870_v7  ;;  %v770_v12 = vpop.permute.xlu1 %769  ;;  %v843_v61 = vadd.bf16 %v839_v5, %v789_v8  ;;  %v844_v14 = vadd.bf16 %v840_v6, %v790_v9 }
 0x19c   : > { %v778_v62 = vrot.slane %v770_v12, %v1814_v40  ;;  %v820_v13 = vpop.permute.xlu0 %819 }
 0x19d   : > { %v893_v58 = vmul.bf16 %v1429_v11, %v1858_v36  ;;  %v894_v15 = vmul.bf16 %v1429_v11, %v1860_v38  ;;  %v828_v54 = vrot.slane %v820_v13, %v1814_v40 }
 0x19e   : > { %v1426_v57 = vcombine.low %v778_v62, %v778_v62 }
 0x19f   : > { %v897_v22 = vadd.bf16 %v893_v58, %v843_v61  ;;  %v898_v23 = vadd.bf16 %v894_v15, %v844_v14  ;;  %v1428_v24 = vcombine.low %v828_v54, %v828_v54  ;;  %v874_v18 = vpop.permute.xlu1 %873 }
 0x1a0   : > { %v791_v19 = vmul.bf16 %v1426_v57, %v1873_v3  ;;  %v792_v25 = vmul.bf16 %v1426_v57, %v1875_v60  ;;  %v882_v26 = vrot.slane %v874_v18, %v1814_v40  ;;  %v1438_v3 = vld.sshfl [vmem:[%s2013_s4 + $0x4] sm:$0x11 pattern:$0x75316420]  ;;  %v1217_v35 = vpop.permute.xlu0 %1216 }
 0x1a1   : > { %v841_v28 = vmul.bf16 %v1428_v24, %v1759_v2  ;;  %v842_v29 = vmul.bf16 %v1428_v24, %v1756_v1  ;;  %v1095_v40 = vcombine.high %v1438_v3, %v1438_v3  ;;  %v1440_v1 = vld.sshfl [vmem:[%s2013_s4 + $0x6] sm:$0x11 pattern:$0x75316420]  ;;  %v1102_v2 = vrot.slane %v1438_v3, %v1808_v37 }
 0x1a2   : > { %v1430_v36 = vcombine.low %v882_v26, %v882_v26  ;;  %v1175_v27 = vrot.slane %v1440_v1, %v1808_v37 }
 0x1a3   : > { %v845_v30 = vadd.bf16 %v841_v28, %v791_v19  ;;  %v846_v38 = vadd.bf16 %v842_v29, %v792_v25  ;;  %v1109_v60 = vrot.slane %v1095_v40, %v1808_v37  ;;  %v1111_v33 = vpack.i.b16 %v1102_v2, %v1102_v2  ;;  %v1222_v39 = vpop.permute.xlu1 %1221 }
 0x1a4   : > { %v895_v31 = vmul.bf16 %v1430_v36, %v1888_v16  ;;  %v896_v20 = vmul.bf16 %v1430_v36, %v1890_v17  ;;  %v1168_v16 = vcombine.high %v1440_v1, %v1440_v1  ;;  %v1184_v44 = vpack.i.b16 %v1175_v27, %v1175_v27 }
 0x1a5   : > { %v1118_v17 = vpack.i.b16 %v1109_v60, %v1109_v60  ;;  %v1116_v41 = vrot.slane %v1111_v33, %v1819_v46 }
 0x1a6   : > { %v1930_v21 = vadd.bf16 %v895_v31, %v845_v30  ;;  %v1932_v32 = vadd.bf16 %v896_v20, %v846_v38  ;;  %v1182_v34 = vrot.slane %v1168_v16, %v1808_v37  ;;  %v1189_v37 = vrot.slane %v1184_v44, %v1819_v46 }
 0x1a7   : > { %v1123_v43 = vrot.slane %v1118_v17, %v1819_v46 }
 0x1a8   : > { %v1191_v45 = vpack.i.b16 %v1182_v34, %v1182_v34 }
 0x1aa   : > { %v1196_v52 = vrot.slane %v1191_v45, %v1819_v46 }
 0x1f1   : > { %v1062_v47 = vpop.permute.xlu0 %1061  ;;  %v1068_v42 = vpop.permute.xlu1 %1067 }
 0x1f2   : > { %v1072_v48 = vsel %vm1071_vm4, %v1068_v42, %v1062_v47  ;;  %v1079_v49 = vsel %vm1071_vm4, %v1062_v47, %v1068_v42 }
 0x1f3   : > { %v1124_v50 = vmul.bf16 %v1116_v41, %v1079_v49  ;;  %v1125_v51 = vmul.bf16 %v1123_v43, %v1072_v48  ;;  %v1310_v48 = vunpack.c.l.bf16 %v1686_v10 }
 0x1f5   : > { %v1137_v55 = vpop.permute.xlu0 %1136  ;;  %v1139_v56 = vpop.permute.xlu1 %1138  ;;  %v1128_v63 = vadd.bf16 %v1124_v50, %v897_v22  ;;  %v1129_v0 = vadd.bf16 %v1125_v51, %v898_v23  ;;  %v1312_v51 = vcombine.high %v1310_v48, %v1310_v48 }
 0x1f6   : > { %v1145_v59 = vsel %vm1144_vm5, %v1137_v55, %v1139_v56  ;;  %v1152_v53 = vsel %vm1144_vm5, %v1139_v56, %v1137_v55 }
 0x1f7   : > { %v1197_v4 = vmul.bf16 %v1189_v37, %v1145_v59  ;;  %v1198_v5 = vmul.bf16 %v1196_v52, %v1152_v53 }
 0x1f9   : > { %v1064_v6 = vpop.permute.xlu0 %1063  ;;  %v1201_v7 = vadd.bf16 %v1197_v4, %v1128_v63  ;;  %v1202_v8 = vadd.bf16 %v1198_v5, %v1129_v0  ;;  %v1070_v9 = vpop.permute.xlu1 %1069 }
 0x1fa   : > { %v1073_v57 = vsel %vm1071_vm4, %v1070_v9, %v1064_v6  ;;  %v1083_v22 = vsel %vm1071_vm4, %v1064_v6, %v1070_v9 }
 0x1fb   : > { %v1206_v11 = vunpack.c.l.bf16 %v1202_v8  ;;  %v1208_v12 = vunpack.c.h.bf16 %v1202_v8  ;;  %v1205_v61 = vunpack.c.l.bf16 %v1201_v7  ;;  %v1207_v62 = vunpack.c.h.bf16 %v1201_v7 }
 0x1fc   : > { %v1126_v36 = vmul.bf16 %v1116_v41, %v1083_v22  ;;  %v1127_v30 = vmul.bf16 %v1123_v43, %v1073_v57 }
 0x1fd   : > { %v1230_v13 = vadd.f32 %v1217_v35, %v1206_v11  ;;  %v1232_v46 = vadd.f32 %v1222_v39, %v1208_v12  ;;  %v1141_v14 = vpop.permute.xlu0 %1140  ;;  %v1143_v58 = vpop.permute.xlu1 %1142  ;;  %v1229_v15 = vadd.f32 %v1217_v35, %v1205_v61  ;;  %v1231_v54 = vadd.f32 %v1222_v39, %v1207_v62 }
 0x1fe   : > { %v1146_v25 = vsel %vm1144_vm5, %v1141_v14, %v1143_v58  ;;  %v1156_v26 = vsel %vm1144_vm5, %v1143_v58, %v1141_v14  ;;  %v1130_v2 = vadd.bf16 %v1126_v36, %v1930_v21  ;;  %v1131_v60 = vadd.bf16 %v1127_v30, %v1932_v32  ;;  %v1251_v32 = vld [vmem:[%s2015_s6] sm:$0x3] }
 0x1ff   : > { %v1236_v23 = vmax.f32 %v1230_v13, 0.0  ;;  %v1238_v24 = vmax.f32 %v1232_v46, 0.0  ;;  %v1235_v18 = vmax.f32 %v1229_v15, 0.0  ;;  %v1237_v19 = vmax.f32 %v1231_v54, 0.0 }
 0x200   : > { %v1199_v3 = vmul.bf16 %v1189_v37, %v1146_v25  ;;  %v1200_v40 = vmul.bf16 %v1196_v52, %v1156_v26 }
 0x201   : > { %v1242_v28 = vmin.f32 %v1236_v23, 6.0  ;;  %v1244_v29 = vmin.f32 %v1238_v24, 6.0  ;;  %v1241_v38 = vmin.f32 %v1235_v18, 6.0  ;;  %v1243_v31 = vmin.f32 %v1237_v19, 6.0 }
 0x202   : > { %v1203_v16 = vadd.bf16 %v1199_v3, %v1130_v2  ;;  %v1204_v33 = vadd.bf16 %v1200_v40, %v1131_v60 }
 0x203   : > { %v1248_v20 = vpack.c.bf16 %v1244_v29, %v1242_v28  ;;  %v1247_v1 = vpack.c.bf16 %v1243_v31, %v1241_v38 }
 0x204   : > { %v1209_v17 = vunpack.c.l.bf16 %v1203_v16  ;;  %v1210_v27 = vunpack.c.l.bf16 %v1204_v33 }
 0x205   : > { %1269 = vmatprep.subr.bf16.mxu1 %v1248_v20 }
 0x206   : > { %1270 = vmatpush1.bf16.msra.mxu1 %v1247_v1 }
 0x20e   : > { %v1227_v34 = vpop.permute.xlu0 %1226  ;;  %v1256_v49 = vpop.permute.xlu1 %1255 }
 0x20f   : > { %v1233_v35 = vadd.f32 %v1227_v34, %v1209_v17  ;;  %v1234_v39 = vadd.f32 %v1227_v34, %v1210_v27 }
 0x211   : > { %v1239_v41 = vmax.f32 %v1233_v35, 0.0  ;;  %v1240_v43 = vmax.f32 %v1234_v39, 0.0 }
 0x213   : > { %v1245_v44 = vmin.f32 %v1239_v41, 6.0  ;;  %v1246_v45 = vmin.f32 %v1240_v43, 6.0 }
 0x215   : > { %v1249_v47 = vpack.c.bf16 %v1245_v44, %v1245_v44  ;;  %v1250_v42 = vpack.c.bf16 %v1246_v45, %v1246_v45 }
 0x217   : > { %1441 = vmatprep.subr.msk.bf16.mxu1 %vm1262_vm6, %v1250_v42  ;;  %v1264_v21 = vsel %vm1262_vm6, %v1249_v47, 0 }
 0x218   : > { %1272 = vmatpush1.bf16.msra.mxu1 %v1264_v21 }
 0x21b   : > { %1442 = vmatmul.mubr.msk.bf16.vlgmr.msra.gmra.mrb[0].mxu1 %vm1258_vm7, %v1251_v32 }
 0x2ee   : > { %v1303_v50 = vpop.f32.mrb[0].mxu1 }
 0x2ef   : > { %v1304_v37 = vadd.f32 %v1303_v50, %v1256_v49  ;;  %v1305_v52 = vpop.f32.mrb[1].mxu1 }
 0x2f0   : > { %v1306_v55 = vadd.f32 %v1305_v52, %v1256_v49  ;;  %v1307_v56 = vpop.f32.mrb[2].mxu1 }
 0x2f1   : > { %v1314_v59 = vadd.f32 %v1310_v48, %v1304_v37  ;;  %v1308_v53 = vpop.f32.mrb[3].mxu1 }
 0x2f2   : > { %v1315_v63 = vadd.f32 %v1312_v51, %v1306_v55 }
 0x2f4   : > { %v1443_v0 = vpack.c.bf16 %v1315_v63, %v1314_v59 }
 0x2f6   : > { %1444 = vst.sshfl [vmem:[%s298_s20] sm:$0x33 pattern:$0x76325410] %v1443_v0 }
 0x2f7   : > { %1516 = shalt.err (!%p1513_p3)
}
 0x2f8   : > { %s1517_s13 = scalar_lea.hbm %s1967_s24, 64  ;;  %s1521_s19 = scalar_lea.hbm %s2017_s8, 128 }
 0x2f9   : > { %p1518_p4 = scmp.ne.s32.totalorder %s1967_s24, %s1517_s13  ;;  %p1522_p9 = scmp.lt.u32.totalorder %s1967_s24, %s2017_s8 }
 0x2fa   : > { %p1523_p10 = scmp.lt.u32.totalorder %s1521_s19, %s1517_s13  ;;  %p1525_p12 = scmp.lt.u32.totalorder %s1517_s13, %s1967_s24 }
 0x2fb   : > { %p1519_p7 = pnand %p1518_p4, %p1659_p5 }
 0x2fc   : > { %p1524_p11 = por %p1523_p10, %p1522_p9 }
 0x2fd   : > { %p1520_p8 = pneg %p1519_p7 }
 0x2fe   : > { %p1526_p13 = por %p1525_p12, %p1524_p11 }
 0x300   : > { %p1527_p0 = pnand %p1526_p13, %p1520_p8 }
 0x302   : > { %1530 = shalt.err (!%p1527_p0)
}
 0x303   : > { %1452 = dma.vmem_to_hbm [thread:$0]  (%p1659_p5), %s1969_s21, 64, %s1967_s24, %s1331_s25  }
 0x304 PF: > { %p1458_p1 = scmp.ge.s32.totalorder %s1565_s30, 2  ;;  %s1357_s23 = sand.u32 1, %s1553_s27  }
 0x305   : > { %s1358_s26 = scalar_lea.sflag [#allocation3], %s1357_s23 }
 0x306   : > { %p1455_p2 = pnand %p1458_p1, %p1663_p6 }
 0x308   : > { %1548 = dma.done.wait (!%p1455_p2), %s1358_s26, 64  }
 0x309   : > { %1550 = vsyncadd (!%p1455_p2), %s1358_s26, 4294967232  ;;  %p18_p3 = scmp.ge.s32.totalorder %s1646_s11, 4   ;;  %s2020_s27 = smov %s1557_s28 }
 0x30a   : > { %s2021_s28 = smov %s1561_s29  ;;  %s2022_s29 = smov %s1657_s14 }
 0x30b   : > { %s2023_s30 = smov %s1646_s11  ;;  %20 = sbr.rel (!%p18_p3) target bundleno = 3 (0x3), region = 90 }
 0x312   :  { %1363 = vsyncpa [#allocation3], 1 }
 0x313   :  { %1365 = vsyncpa [#allocation3 + $0x1], 1 }

</bundles_post_ra>
